<compile_context>
chip_gen: v5e
topology: v5e:2x2
jax: 0.10.0
libtpu: 0.0.40
codegen_flags: <defaults>
</compile_context>

<pallas_src>
import jax
import jax.numpy as jnp
from jax.experimental import pallas as pl
from jax.experimental.pallas import tpu as pltpu


def additive_attention_kernel(enc_ref, dec_ref, w1_ref, w2_ref, v_ref,
                              ctx_ref, probs_ref):
    """One batch-block of AdditiveAttention.

    enc_ref:   [Bb, T, E]  encoder_states block (kept in input dtype for the MXU)
    dec_ref:   [Bb, D]     decoder_state block
    w1_ref:    [E, I]      w1 weight (transposed vs torch)
    w2_ref:    [D, I]      w2 weight (transposed vs torch)
    v_ref:     [1, I]      lane-dense v row
    ctx_ref:   [Bb, E]     final_context_vec
    probs_ref: [Bb, T]     attention probs (unsqueezed to [Bb, T, 1] in the wrapper)
    """
    enc = enc_ref[...]                      # input dtype (f32 or bf16) straight to MXU
    dec = dec_ref[...]
    w1 = w1_ref[...]
    w2 = w2_ref[...]
    v_row = v_ref[...].astype(jnp.float32)  # [1, I]

    Bb, T, E = enc.shape
    I = w1.shape[1]

    # score(enc_t, dec) = v . tanh(w1(enc_t) + w2(dec))
    # NOTE: the (Bb, T, E) -> (Bb*T, E) reshape is layout-free only because T is a
    # multiple of the f32 sublane tile (8). If T % 8 != 0 (or bf16 activations with
    # a 16-row sublane tile), switch to a batched dot_general on the 3-D layout to
    # avoid a materialized VMEM relayout.
    h_enc = jnp.dot(enc.reshape(Bb * T, E), w1,
                    preferred_element_type=jnp.float32).reshape(Bb, T, I)
    h_dec = jnp.dot(dec, w2, preferred_element_type=jnp.float32)          # [Bb, I]
    h = jnp.tanh(h_enc + h_dec[:, None, :])                               # [Bb, T, I] f32 (EUP)

    # v-contraction: a width-1 MXU matmul wastes 127/255 output lanes and forces a
    # relayout of its (Bb*T, 1) result; a VPU mul + lane reduction uses otherwise
    # idle VPU/XLU slots instead.
    scores = jnp.sum(h * v_row, axis=-1)                                  # [Bb, T] f32

    # Numerically stable softmax over the sequence axis (torch dim=1), all f32.
    m = jnp.max(scores, axis=1, keepdims=True)
    e = jnp.exp(scores - m)
    probs = e / jnp.sum(e, axis=1, keepdims=True)                         # [Bb, T]

    # final_context_vec = sum_t probs[b, t] * enc[b, t, :]  (f32 accumulation)
    ctx = jnp.sum(probs[:, :, None] * enc.astype(jnp.float32), axis=1)    # [Bb, E]

    ctx_ref[...] = ctx.astype(ctx_ref.dtype)
    probs_ref[...] = probs.astype(probs_ref.dtype)


def additive_attention(encoder_states, decoder_state, w1, w2, v, *, block_b=None):
    """AdditiveAttention forward.

    encoder_states: [B, T, E], decoder_state: [B, D]
    w1: [E, I], w2: [D, I] (transposed vs torch Linear weights), v: any shape with I
    elements (reshaped to lane-dense [1, I]).

    Callers should fold extra leading dims (modes / hypotheses / decode steps /
    agents) into B; the batch axis is gridded in blocks and marked "parallel" so
    large B amortizes fixed pallas_call/DMA overhead and splits across TensorCores
    on v7x.

    Returns (final_context_vec [B, E], attention_probs [B, T, 1]).
    """
    B, T, E = encoder_states.shape
    _, D = decoder_state.shape
    I = w1.shape[1]
    v = jnp.reshape(v, (1, I))  # lane-dense row vector

    if block_b is None:
        # Keep per-step VMEM modest (inputs are double-buffered); at E=32, T=8 a
        # 256-row block is ~tens of KiB, far below v7x's 32 MiB scoped default.
        block_b = B if B <= 256 else 256
    grid = (pl.cdiv(B, block_b),)

    ctx, probs = pl.pallas_call(
        additive_attention_kernel,
        out_shape=(
            jax.ShapeDtypeStruct((B, E), encoder_states.dtype),
            jax.ShapeDtypeStruct((B, T), encoder_states.dtype),
        ),
        grid_spec=pltpu.PrefetchScalarGridSpec(
            num_scalar_prefetch=0,
            grid=grid,
            in_specs=[
                pl.BlockSpec((block_b, T, E), lambda b: (b, 0, 0)),
                pl.BlockSpec((block_b, D), lambda b: (b, 0)),
                pl.BlockSpec((E, I), lambda b: (0, 0)),
                pl.BlockSpec((D, I), lambda b: (0, 0)),
                pl.BlockSpec((1, I), lambda b: (0, 0)),
            ],
            out_specs=[
                pl.BlockSpec((block_b, E), lambda b: (b, 0)),
                pl.BlockSpec((block_b, T), lambda b: (b, 0)),
            ],
        ),
        compiler_params=pltpu.CompilerParams(
            dimension_semantics=("parallel",)),
    )(encoder_states, decoder_state, w1, w2, v)

    # Match PyTorch: attention_probs is [B, T, 1].
    # NOTE: outputs are stored in encoder_states.dtype; with bf16 inputs the probs
    # lose precision vs. the all-f32 torch module (documented, acceptable).
    return ctx, probs[..., None]


def reference(encoder_states, decoder_state, w1, w2, v):
    h = jnp.tanh(jnp.einsum('bte,ei->bti', encoder_states, w1)
                 + jnp.einsum('bd,di->bi', decoder_state, w2)[:, None, :])
    scores = jnp.einsum('bti,i->bt', h, v.reshape(-1))
    probs = jax.nn.softmax(scores, axis=1)
    ctx = jnp.sum(probs[:, :, None] * encoder_states, axis=1)
    return ctx, probs[..., None]


if __name__ == "__main__":
    # Module dims: encoder_hidden_state_dim=32, decoder_hidden_state_dim=32,
    # internal_dim = (32 + 32) // 2 = 32. Sequence length T=8, batch B=2.
    B, T, E, D = 2, 8, 32, 32
    I = (E + D) // 2

    key = jax.random.PRNGKey(0)
    k_enc, k_dec, k_w1, k_w2, k_v = jax.random.split(key, 5)

    encoder_states = jax.random.normal(k_enc, (B, T, E), dtype=jnp.float32)
    decoder_state = jax.random.normal(k_dec, (B, D), dtype=jnp.float32)

    # Deterministic "Linear" weights (no bias in the module), stored as [in, out];
    # v is stored lane-dense as [1, I] (same shape torch gives Linear(I, 1).weight).
    w1 = jax.random.normal(k_w1, (E, I), dtype=jnp.float32) * 0.1
    w2 = jax.random.normal(k_w2, (D, I), dtype=jnp.float32) * 0.1
    v = jax.random.normal(k_v, (1, I), dtype=jnp.float32) * 0.1

    ctx, probs = additive_attention(encoder_states, decoder_state, w1, w2, v)
    jax.block_until_ready((ctx, probs))

    ctx_ref, probs_ref = reference(encoder_states, decoder_state, w1, w2, v)
    assert ctx.shape == (B, E) and probs.shape == (B, T, 1)
    assert jnp.allclose(ctx, ctx_ref, atol=1e-5, rtol=1e-5)
    assert jnp.allclose(probs, probs_ref, atol=1e-5, rtol=1e-5)

    print("KERNEL_OK")
</pallas_src>

<mosaic_0001>
module attributes {stable_mosaic.version = 11 : i64} {
  func.func @additive_attention_kernel(%arg0: i32, %arg1: memref<2x8x32xf32, #tpu.memory_space<vmem>>, %arg2: memref<2x32xf32, #tpu.memory_space<vmem>>, %arg3: memref<32x32xf32, #tpu.memory_space<vmem>>, %arg4: memref<32x32xf32, #tpu.memory_space<vmem>>, %arg5: memref<1x32xf32, #tpu.memory_space<vmem>>, %arg6: memref<2x32xf32, #tpu.memory_space<vmem>>, %arg7: memref<2x8xf32, #tpu.memory_space<vmem>>) attributes {dimension_semantics = [#tpu.dimension_semantics<parallel>], iteration_bounds = array<i64: 1>, scalar_prefetch = 0 : i64, scratch_operands = 0 : i64, tpu.core_type = #tpu.core_type<tc>, window_params = [{transform_indices = @transform_0, window_bounds = array<i64: 2, 8, 32>}, {transform_indices = @transform_1, window_bounds = array<i64: 2, 32>}, {pipeline_mode = #tpu.pipeline_mode<synchronous>, transform_indices = @transform_2, window_bounds = array<i64: 32, 32>}, {pipeline_mode = #tpu.pipeline_mode<synchronous>, transform_indices = @transform_3, window_bounds = array<i64: 32, 32>}, {pipeline_mode = #tpu.pipeline_mode<synchronous>, transform_indices = @transform_4, window_bounds = array<i64: 1, 32>}, {transform_indices = @transform_5, window_bounds = array<i64: 2, 32>}, {transform_indices = @transform_6, window_bounds = array<i64: 2, 8>}]} {
    %c0 = arith.constant 0 : index
    %c0_0 = arith.constant 0 : index
    %c0_1 = arith.constant 0 : index
    %0 = vector.load %arg1[%c0, %c0_0, %c0_1] : memref<2x8x32xf32, #tpu.memory_space<vmem>>, vector<2x8x32xf32>
    %c0_2 = arith.constant 0 : index
    %c0_3 = arith.constant 0 : index
    %1 = vector.load %arg2[%c0_2, %c0_3] : memref<2x32xf32, #tpu.memory_space<vmem>>, vector<2x32xf32>
    %c0_4 = arith.constant 0 : index
    %c0_5 = arith.constant 0 : index
    %2 = vector.load %arg3[%c0_4, %c0_5] : memref<32x32xf32, #tpu.memory_space<vmem>>, vector<32x32xf32>
    %c0_6 = arith.constant 0 : index
    %c0_7 = arith.constant 0 : index
    %3 = vector.load %arg4[%c0_6, %c0_7] : memref<32x32xf32, #tpu.memory_space<vmem>>, vector<32x32xf32>
    %c0_8 = arith.constant 0 : index
    %c0_9 = arith.constant 0 : index
    %4 = vector.load %arg5[%c0_8, %c0_9] : memref<1x32xf32, #tpu.memory_space<vmem>>, vector<1x32xf32>
    %5 = vector.shape_cast %0 : vector<2x8x32xf32> to vector<16x32xf32>
    %cst = arith.constant dense<0.000000e+00> : vector<16x32xf32>
    %6 = tpu.matmul %5, %2, %cst {dimension_numbers = #tpu.dot_dimension_numbers<[1], [0], [0], [1], [0, 0, 1, 1], [], []>} : vector<16x32xf32>, vector<32x32xf32>, vector<16x32xf32> -> vector<16x32xf32>
    %7 = vector.shape_cast %6 : vector<16x32xf32> to vector<2x8x32xf32>
    %cst_10 = arith.constant dense<0.000000e+00> : vector<2x32xf32>
    %8 = tpu.matmul %1, %3, %cst_10 {dimension_numbers = #tpu.dot_dimension_numbers<[1], [0], [0], [1], [0, 0, 1, 1], [], []>} : vector<2x32xf32>, vector<32x32xf32>, vector<2x32xf32> -> vector<2x32xf32>
    %9 = vector.shape_cast %8 : vector<2x32xf32> to vector<2x1x32xf32>
    %10 = vector.broadcast %9 : vector<2x1x32xf32> to vector<2x8x32xf32>
    %11 = arith.addf %7, %10 : vector<2x8x32xf32>
    %12 = math.tanh %11 : vector<2x8x32xf32>
    %13 = vector.shape_cast %4 : vector<1x32xf32> to vector<1x1x32xf32>
    %14 = vector.broadcast %13 : vector<1x1x32xf32> to vector<2x8x32xf32>
    %15 = arith.mulf %12, %14 : vector<2x8x32xf32>
    %cst_11 = arith.constant dense<0.000000e+00> : vector<2x8xf32>
    %16 = vector.multi_reduction <add>, %15, %cst_11 [2] : vector<2x8x32xf32> to vector<2x8xf32>
    %cst_12 = arith.constant dense<0xFF800000> : vector<2xf32>
    %17 = vector.multi_reduction <maximumf>, %16, %cst_12 [1] : vector<2x8xf32> to vector<2xf32>
    %18 = vector.shape_cast %17 : vector<2xf32> to vector<2x1xf32>
    %19 = vector.broadcast %18 : vector<2x1xf32> to vector<2x8xf32>
    %20 = arith.subf %16, %19 : vector<2x8xf32>
    %21 = math.exp %20 : vector<2x8xf32>
    %cst_13 = arith.constant dense<0.000000e+00> : vector<2xf32>
    %22 = vector.multi_reduction <add>, %21, %cst_13 [1] : vector<2x8xf32> to vector<2xf32>
    %23 = vector.shape_cast %22 : vector<2xf32> to vector<2x1xf32>
    %24 = vector.broadcast %23 : vector<2x1xf32> to vector<2x8xf32>
    %25 = arith.divf %21, %24 : vector<2x8xf32>
    %26 = vector.shape_cast %25 : vector<2x8xf32> to vector<2x8x1xf32>
    %27 = vector.broadcast %26 : vector<2x8x1xf32> to vector<2x8x32xf32>
    %28 = arith.mulf %27, %0 : vector<2x8x32xf32>
    %cst_14 = arith.constant dense<0.000000e+00> : vector<2x32xf32>
    %29 = vector.multi_reduction <add>, %28, %cst_14 [1] : vector<2x8x32xf32> to vector<2x32xf32>
    %c0_15 = arith.constant 0 : index
    %c0_16 = arith.constant 0 : index
    %30 = vector.load %arg6[%c0_15, %c0_16] : memref<2x32xf32, #tpu.memory_space<vmem>>, vector<2x32xf32>
    tpu.vector_store %arg6[%c0_15, %c0_16], %29 {strides = array<i32>} : memref<2x32xf32, #tpu.memory_space<vmem>>, vector<2x32xf32>,
    %c0_17 = arith.constant 0 : index
    %c0_18 = arith.constant 0 : index
    %31 = vector.load %arg7[%c0_17, %c0_18] : memref<2x8xf32, #tpu.memory_space<vmem>>, vector<2x8xf32>
    tpu.vector_store %arg7[%c0_17, %c0_18], %25 {strides = array<i32>} : memref<2x8xf32, #tpu.memory_space<vmem>>, vector<2x8xf32>,
    return
  }
  func.func @transform_0(%arg0: i32) -> (i32, i32, i32) {
    %c0_i32 = arith.constant 0 : i32
    %c0_i32_0 = arith.constant 0 : i32
    %c0_i32_1 = arith.constant 0 : i32
    return %arg0, %c0_i32, %c0_i32_0 : i32, i32, i32
  }
  func.func @transform_1(%arg0: i32) -> (i32, i32) {
    %c0_i32 = arith.constant 0 : i32
    %c0_i32_0 = arith.constant 0 : i32
    return %arg0, %c0_i32 : i32, i32
  }
  func.func @transform_2(%arg0: i32) -> (i32, i32) {
    %c0_i32 = arith.constant 0 : i32
    %c0_i32_0 = arith.constant 0 : i32
    %c0_i32_1 = arith.constant 0 : i32
    return %c0_i32, %c0_i32_0 : i32, i32
  }
  func.func @transform_3(%arg0: i32) -> (i32, i32) {
    %c0_i32 = arith.constant 0 : i32
    %c0_i32_0 = arith.constant 0 : i32
    %c0_i32_1 = arith.constant 0 : i32
    return %c0_i32, %c0_i32_0 : i32, i32
  }
  func.func @transform_4(%arg0: i32) -> (i32, i32) {
    %c0_i32 = arith.constant 0 : i32
    %c0_i32_0 = arith.constant 0 : i32
    %c0_i32_1 = arith.constant 0 : i32
    return %c0_i32, %c0_i32_0 : i32, i32
  }
  func.func @transform_5(%arg0: i32) -> (i32, i32) {
    %c0_i32 = arith.constant 0 : i32
    %c0_i32_0 = arith.constant 0 : i32
    return %arg0, %c0_i32 : i32, i32
  }
  func.func @transform_6(%arg0: i32) -> (i32, i32) {
    %c0_i32 = arith.constant 0 : i32
    %c0_i32_0 = arith.constant 0 : i32
    return %arg0, %c0_i32 : i32, i32
  }
}

</mosaic_0001>

<bundles_post_ra>
// kernel: tpu_custom_call.1
= control target key start
LH: loop header
LB: loop body
LE: loop exit
PB: predicated region body
PF: predicated region fallthrough
CT: control target
= control target key end

     0   :  { %12 = vsyncpa [#allocation3], 0  ;;  %s598_s0 = inlined_call_operand.hbm [shape: f32[2,8,32], index: 0, kind: input, shape index: {}]   ;;  %s599_s1 = inlined_call_operand.hbm [shape: f32[2,32], index: 1, kind: input, shape index: {}]   ;;  %s600_s2 = inlined_call_operand.hbm [shape: f32[32,32], index: 2, kind: input, shape index: {}]   ;;  %s601_s3 = inlined_call_operand.hbm [shape: f32[32,32], index: 3, kind: input, shape index: {}]   ;;  %s602_s4 = inlined_call_operand.vmem [shape: f32[1,32], index: 4, kind: input, shape index: {}]   ;;  %s603_s5 = inlined_call_operand.hbm [shape: f32[2,32], index: 5, kind: output, shape index: {0}]   ;;  %s604_s6 = inlined_call_operand.hbm [shape: f32[2,8], index: 6, kind: output, shape index: {1}]  }
   0x1   :  { %13 = vsyncpa [#allocation6], 0 }
   0x2   :  { %14 = vsyncpa [#allocation9], 0 }
   0x3   :  { %15 = vsyncpa [#allocation4], 0  ;;  %s35_s23 = sshll.u32 %s599_s1, 4  ;;  %s36_s23 = int_to_ptr.hbm [resolvable:$true] %s35_s23 }
   0x4   :  { %16 = vsyncpa [#allocation12], 0  ;;  %s503_s24 = smov [#allocation5]   ;;  %s21_s28 = sshll.u32 %s598_s0, 4  ;;  %s22_s28 = int_to_ptr.hbm [resolvable:$true] %s21_s28 }
   0x5   :  { %s37_s25 = sshll.u32 %s503_s24, 4  ;;  %s504_s29 = smov [#allocation2]   ;;  %s38_s25 = int_to_ptr.vmem [resolvable:$true] %s37_s25 }
   0x6   :  { %40 = dma.hbm_to_vmem [thread:$0]  %s36_s23, 32, %s38_s25, [#allocation6]  }
   0x7   :  { %s23_s30 = sshll.u32 %s504_s29, 4  ;;  %s505_s7 = smov 128   ;;  %s24_s30 = int_to_ptr.vmem [resolvable:$true] %s23_s30 }
   0x8   :  { %s506_s8 = smov 8   ;;  %s45_s1 = sshll.u32 %s600_s2, 4  ;;  %s46_s1 = int_to_ptr.hbm [resolvable:$true] %s45_s1 }
   0x9   :  { %29 = dma.hbm_to_vmem [thread:$0]  %s22_s28, 256, %s24_s30, [#allocation3], %s505_s7, %s505_s7, %s506_s8  }
   0xa   :  { %s507_s11 = smov [#allocation7]   ;;  %s58_s0 = sshll.u32 %s601_s3, 4  ;;  %s59_s0 = int_to_ptr.hbm [resolvable:$true] %s58_s0 }
   0xb   :  { %s47_s12 = sshll.u32 %s507_s11, 4  ;;  %s508_s15 = smov [#allocation8]   ;;  %s48_s12 = int_to_ptr.vmem [resolvable:$true] %s47_s12 }
   0xc   :  { %53 = dma.hbm_to_vmem [thread:$0]  %s46_s1, 512, %s48_s12, [#allocation6], %s505_s7, %s505_s7, %s506_s8  }
   0xd   :  { %s60_s16 = sshll.u32 %s508_s15, 4  ;;  %s61_s16 = int_to_ptr.vmem [resolvable:$true] %s60_s16 }
   0xe   :  { %66 = dma.hbm_to_vmem [thread:$0]  %s59_s0, 512, %s61_s16, [#allocation9], %s505_s7, %s505_s7, %s506_s8  }
   0xf   :  { %493 = dma.done.wait [#allocation3], 256  }
  0x10   :  { %494 = vsyncadd [#allocation3], 4294967040 }
  0x11   :  { %495 = dma.done.wait [#allocation6], 544  }
  0x12   :  { %496 = vsyncadd [#allocation6], 4294966752 }
  0x13   :  { %497 = dma.done.wait [#allocation9], 512  }
  0x14   :  { %498 = vsyncadd [#allocation9], 4294966784  ;;  %v91_v0 = vld [vmem:[#allocation7 + $0x18] sm:$0xff]  ;;  %v90_v2 = vld [vmem:[#allocation7 + $0x10] sm:$0xff]  ;;  %vm97_vm0 = vcmask 261120   ;;  %v173_v27 = vlaneseq  ;;  %vm177_vm1 = vcmask 1041409  }
  0x15   :  { %v95_v1 = vld [vmem:[#allocation8 + $0x18] sm:$0xff]  ;;  %320 = vmatpush.msra.mxu2 %v91_v0  ;;  %v94_v3 = vld [vmem:[#allocation8 + $0x10] sm:$0xff]  ;;  %116 = vmatpush.msra.mxu0 %v91_v0  ;;  %v89_v4 = vld [vmem:[#allocation7 + $0x8] sm:$0xff]  ;;  %vm180_vm2 = vcmask 58368   ;;  %v509_v34 = vmov 0   ;;  %s300_s20 = sshll.u32 %s604_s6, 4  ;;  %s301_s20 = int_to_ptr.hbm [resolvable:$true] %s300_s20 }
  0x16   :  { %142 = vmatpush.msra.mxu1 %v95_v1  ;;  %v93_v5 = vld [vmem:[#allocation8 + $0x8] sm:$0xff]  ;;  %v88_v6 = vld [vmem:[#allocation7] sm:$0xff]  ;;  %v559_v8 = vld [vmem:[#allocation2 + $0x8] sm:$0xff]  ;;  %v573_v28 = vand.u32 127, %v173_v27  ;;  %334 = vset.pattern.permute.xlu2 %v509_v34  ;;  %s511_s6 = smov [#allocation10]   ;;  %s289_s24 = sshll.u32 %s603_s5, 4  ;;  %s290_s24 = int_to_ptr.hbm [resolvable:$true] %s289_s24 }
  0x17   :  { %321 = vmatpush.msra.mxu2 %v90_v2  ;;  %117 = vmatpush.msra.mxu0 %v90_v2  ;;  %v92_v7 = vld [vmem:[#allocation8] sm:$0xff]  ;;  %v87_v9 = vld [vmem:[#allocation5] sm:$0x3]  ;;  %v561_v10 = vld [vmem:[#allocation2] sm:$0xff]  ;;  %s287_s21 = sshll.u32 %s511_s6, 4  ;;  %vm275_vm11 = vcmask 254976   ;;  %s288_s21 = int_to_ptr.vmem [resolvable:$true] %s287_s21 }
  0x18   :  { %143 = vmatpush.msra.mxu1 %v94_v3  ;;  %v336_v19 = vld [vmem:[%s602_s4] ss:$0 sm:$0xff]  ;;  %333 = vset.pattern.permute.xlu1 %v509_v34  ;;  %s510_s4 = smov [#allocation11]  }
  0x19   :  { %322 = vmatpush.msra.mxu2 %v89_v4  ;;  %118 = vmatpush.msra.mxu0 %v89_v4  ;;  %s298_s17 = sshll.u32 %s510_s4, 4  ;;  %s299_s17 = int_to_ptr.vmem [resolvable:$true] %s298_s17 }
  0x1a   :  { %144 = vmatpush.msra.mxu1 %v93_v5  ;;  %335 = vset.pattern.permute.xlu0 %v509_v34 }
  0x1b   :  { %323 = vmatpush.msra.mxu2 %v88_v6  ;;  %119 = vmatpush.msra.mxu0 %v88_v6 }
  0x1c   :  { %145 = vmatpush.msra.mxu1 %v92_v7  ;;  %318 = vmatmul.msk.f32.vlgmr.msra.gmra.mxu2 %vm97_vm0, %v559_v8 }
  0x1d   :  { %319 = vmatmul.msk.f32.vlgmr.msra.gmra.mxu1 %vm97_vm0, %v87_v9  ;;  %317 = vmatmul.msk.f32.vlgmr.msra.gmra.mxu0 %vm97_vm0, %v561_v10 }
  0x9a   :  { %v147_v11 = vpop.f32.mrf.mxu1  ;;  %v121_v14 = vpop.f32.mrf.mxu0 }
  0x9b   :  { %v151_v12 = vrot.slane %v147_v11, 1  ;;  %v152_v13 = vperm.slane %v147_v11, 0 }
  0x9d   :  { %v156_v15 = vadd.f32 %v152_v13, %v121_v14  ;;  %v153_v16 = vperm.slane %v151_v12, 0 }
  0x9f   :  { %337 = vtanh.f32 %v156_v15  ;;  %v124_v17 = vpop.f32.mrf.mxu2 }
  0xa0   :  { %v157_v18 = vadd.f32 %v153_v16, %v124_v17 }
  0xa2   :  { %339 = vtanh.f32 %v157_v18 }
  0xa5   :  { %v338_v20 = vpop.eup %337 }
  0xa6   :  { %v163_v21 = vmul.f32 %v338_v20, %v336_v19 }
  0xa8   :  { %v165_v22 = vsel %vm97_vm0, %v163_v21, 0.0  ;;  %v340_v23 = vpop.eup %339 }
  0xa9   :  { %166 = vadd.xlane.f32.xlu0 %v165_v22  ;;  %v164_v24 = vmul.f32 %v340_v23, %v336_v19 }
  0xab   :  { %v168_v25 = vsel %vm97_vm0, %v164_v24, 0.0 }
  0xb1   :  { %169 = vadd.xlane.f32.xlu0 %v168_v25 }
 0x11c   :  { %v167_v26 = vpop.xlane.xlu0 %166 }
 0x11d   :  { %v175_v30 = vperm.slane %v167_v26, %v573_v28 }
 0x124   :  { %v170_v29 = vpop.xlane.xlu0 %169 }
 0x125   :  { %v176_v31 = vperm.slane %v170_v29, %v573_v28 }
 0x127   :  { %v178_v32 = vsel %vm177_vm1, %v176_v31, %v175_v30 }
 0x128   :  { %v181_v33 = vsel %vm180_vm2, %v178_v32, -inf }
 0x129   :  { %182 = vmax.xlane.f32.xlu1 %v181_v33 }
 0x19c   :  { %v183_v35 = vpop.xlane.xlu1 %182 }
 0x19d   :  { %v185_v36 = vperm.slane %v183_v35, 0  ;;  %v186_v37 = vperm.slane %v183_v35, 1 }
 0x19f   :  { %v189_v38 = vsub.f32 %v167_v26, %v185_v36  ;;  %v190_v39 = vsub.f32 %v170_v29, %v186_v37 }
 0x1a1   :  { %v191_v40 = vmul.f32 1.442695, %v189_v38  ;;  %v193_v41 = vmul.f32 1.442695, %v190_v39 }
 0x1a3   :  { %341 = vpow2.f32 %v191_v40 }
 0x1a4   :  { %343 = vpow2.f32 %v193_v41 }
 0x1a9   :  { %v342_v42 = vpop.eup %341 }
 0x1aa   :  { %v344_v43 = vpop.eup %343  ;;  %198 = vperm.xlu1 %333, %v342_v42  }
 0x1ab   :  { %201 = vperm.xlu2 %334, %v344_v43  }
 0x205   :  { %v202_v44 = vpop.permute.xlu2 %201 }
 0x206   :  { %v204_v46 = vperm.slane %v202_v44, %v573_v28 }
 0x21c   :  { %v199_v45 = vpop.permute.xlu1 %198 }
 0x21d   :  { %v203_v47 = vperm.slane %v199_v45, %v573_v28 }
 0x21f   :  { %v205_v48 = vsel %vm177_vm1, %v204_v46, %v203_v47 }
 0x220   :  { %v207_v49 = vsel %vm180_vm2, %v205_v48, 0.0 }
 0x221   :  { %208 = vadd.xlane.f32.xlu2 %v207_v49 }
 0x294   :  { %v209_v50 = vpop.xlane.xlu2 %208 }
 0x295   :  { %v211_v51 = vperm.slane %v209_v50, 0  ;;  %v212_v52 = vperm.slane %v209_v50, 1 }
 0x297   :  { %345 = vrcp.f32 %v211_v51  ;;  %v226_v59 = vand.u32 2147483648, %v211_v51  ;;  %v241_v60 = vand.u32 2147483648, %v212_v52  ;;  %v224_v62 = vand.u32 2147483647, %v211_v51 }
 0x298   :  { %347 = vrcp.f32 %v212_v52  ;;  %v239_v0 = vand.u32 2147483647, %v212_v52  ;;  %vm220_vm5 = vweird.f32 %v211_v51  ;;  %vm235_vm6 = vweird.f32 %v212_v52 }
 0x299   :  { %v227_v3 = vor.u32 1.1754944e-38, %v226_v59  ;;  %v242_v4 = vor.u32 1.1754944e-38, %v241_v60  ;;  %vm225_vm9 = vcmp.eq.f32.partialorder %v224_v62, 8.507059e+37 }
 0x29a   :  { %vm240_vm10 = vcmp.eq.f32.partialorder %v239_v0, 8.507059e+37 }
 0x29d   :  { %v346_v53 = vpop.eup %345 }
 0x29e   :  { %v348_v54 = vpop.eup %347  ;;  %v216_v55 = vmul.f32 %v346_v53, %v211_v51  ;;  %vm221_vm3 = vweird.f32 %v346_v53 }
 0x29f   :  { %v231_v56 = vmul.f32 %v348_v54, %v212_v52  ;;  %vm236_vm4 = vweird.f32 %v348_v54  ;;  %vm222_vm7 = vmor %vm220_vm5, %vm221_vm3 }
 0x2a0   :  { %v217_v57 = vsub.f32 1.0, %v216_v55  ;;  %vm237_vm8 = vmor %vm235_vm6, %vm236_vm4 }
 0x2a1   :  { %v232_v58 = vsub.f32 1.0, %v231_v56 }
 0x2a2   :  { %v218_v61 = vmul.f32 %v346_v53, %v217_v57 }
 0x2a3   :  { %v233_v63 = vmul.f32 %v348_v54, %v232_v58 }
 0x2a4   :  { %v219_v1 = vadd.f32 %v346_v53, %v218_v61 }
 0x2a5   :  { %v234_v2 = vadd.f32 %v348_v54, %v233_v63 }
 0x2a6   :  { %v223_v5 = vsel %vm222_vm7, %v346_v53, %v219_v1 }
 0x2a7   :  { %v238_v6 = vsel %vm237_vm8, %v348_v54, %v234_v2  ;;  %v228_v7 = vsel %vm225_vm9, %v227_v3, %v223_v5 }
 0x2a8   :  { %v243_v9 = vsel %vm240_vm10, %v242_v4, %v238_v6  ;;  %v229_v11 = vmul.f32 %v342_v42, %v228_v7 }
 0x2a9   :  { %v244_v12 = vmul.f32 %v344_v43, %v243_v9 }
 0x2aa   :  { %247 = vperm.xlu0 %335, %v229_v11  }
 0x2ab   :  { %252 = vperm.xlu1 %333, %v244_v12  }
 0x31c   :  { %v248_v13 = vpop.permute.xlu0 %247 }
 0x31d   :  { %v253_v14 = vpop.permute.xlu1 %252  ;;  %v255_v15 = vmul.f32 %v248_v13, %v561_v10  ;;  %v277_v16 = vperm.slane %v248_v13, %v573_v28 }
 0x31e   :  { %v256_v17 = vmul.f32 %v253_v14, %v559_v8  ;;  %v278_v18 = vperm.slane %v253_v14, %v573_v28 }
 0x31f   :  { %v257_v19 = vsel %vm97_vm0, %v255_v15, 0.0 }
 0x320   :  { %v264_v20 = vsel %vm97_vm0, %v256_v17, 0.0  ;;  %v258_v21 = vrot.slane %v257_v19, 4  ;;  %v279_v22 = vsel %vm177_vm1, %v278_v18, %v277_v16 }
 0x321   :  { %v265_v23 = vrot.slane %v264_v20, 4  ;;  %281 = vst.msk [vmem:[#allocation11] sm:$0x3] %vm180_vm2, %v279_v22 }
 0x322   :  { %v259_v24 = vadd.f32 %v258_v21, %v257_v19  ;;  %303 = dma.vmem_to_hbm [thread:$0]  %s299_s17, 32, %s301_s20, [#allocation12]  }
 0x323   :  { %v266_v10 = vadd.f32 %v265_v23, %v264_v20 }
 0x324   :  { %v260_v25 = vrot.slane %v259_v24, 2 }
 0x325   :  { %v267_v26 = vrot.slane %v266_v10, 2 }
 0x326   :  { %v261_v8 = vadd.f32 %v260_v25, %v259_v24 }
 0x327   :  { %v268_v27 = vadd.f32 %v267_v26, %v266_v10 }
 0x328   :  { %v262_v28 = vrot.slane %v261_v8, 1 }
 0x329   :  { %v269_v29 = vrot.slane %v268_v27, 1 }
 0x32a   :  { %v263_v30 = vadd.f32 %v262_v28, %v261_v8 }
 0x32b   :  { %v270_v31 = vadd.f32 %v269_v29, %v268_v27 }
 0x32d   :  { %v273_v32 = vsel %vm177_vm1, %v270_v31, %v263_v30 }
 0x32e   :  { %276 = vst.msk [vmem:[#allocation10] sm:$0x3] %vm275_vm11, %v273_v32 }
 0x32f   :  { %292 = dma.vmem_to_hbm [thread:$0]  %s288_s21, 32, %s290_s24, [#allocation4]  }
 0x330   :  { %499 = dma.done.wait [#allocation4], 32  }
 0x331   :  { %500 = vsyncadd [#allocation4], 4294967264 }
 0x332   :  { %501 = dma.done.wait [#allocation12], 32  }
 0x333   :  { %502 = vsyncadd [#allocation12], 4294967264 }
 0x334   :  { %312 = vsyncpa [#allocation3], 1 }
 0x335   :  { %313 = vsyncpa [#allocation6], 1 }
 0x336   :  { %314 = vsyncpa [#allocation9], 1 }
 0x337   :  { %315 = vsyncpa [#allocation4], 1 }
 0x338   :  { %316 = vsyncpa [#allocation12], 1 }

</bundles_post_ra>
